<compile_context>
chip_gen: v5e
topology: v5e:2x2
jax: 0.10.0
libtpu: 0.0.40
codegen_flags: <defaults>
</compile_context>

<pallas_src>
import jax
import jax.numpy as jnp
from jax.experimental import pallas as pl
from jax.experimental.pallas import tpu as pltpu


def _round_up(x, m):
    return ((x + m - 1) // m) * m


def mlp_kernel(x_ref, w1_ref, b1_ref, w2_ref, b2_ref, o_ref):
    # x_ref:  (TB, 784) f32      w1_ref: (784, 64) bf16   b1_ref: (1, 64) f32
    # w2_ref: (64, 128) bf16     b2_ref: (1, 128) f32     o_ref:  (TB, 128) bf16
    # Cast x to bf16 in-kernel (hides under the x DMA; avoids a wrapper pass).
    x = x_ref[...].astype(jnp.bfloat16)
    # First matmul: bf16 MXU inputs, f32 accumulate.
    h = jnp.dot(x, w1_ref[...], preferred_element_type=jnp.float32)
    # Bias + ReLU in f32 (VPU-native on all generations).
    h = jnp.maximum(h + b1_ref[...], 0.0)
    # Second matmul into a lane-dense (128-wide, zero-padded) output;
    # f32 accumulate, bf16 on the final store only.
    o = jnp.dot(h.astype(jnp.bfloat16), w2_ref[...],
                preferred_element_type=jnp.float32)
    o_ref[...] = (o + b2_ref[...]).astype(o_ref.dtype)


def mlp_forward(x, w1, b1, w2, b2, *, tb=2048):
    """x: (B, ...) flattened to (B, 784); returns (B, 10) float32 logits."""
    B = x.shape[0]
    x2d = x.reshape(B, -1)                 # torch.flatten(x, start_dim=1)
    IN = x2d.shape[1]                      # 784
    H = w1.shape[1]                        # 64
    NOUT = w2.shape[1]                     # 10
    NP = 128                               # lane-dense padded output width

    # Batch tile: multiple of 16 (bf16 sublane tiling of the output block),
    # big by default (2048) to amortize per-step overhead. When there is
    # enough work, cap TB so the grid has >= 2 steps and both of v7x's
    # TensorCores are fed via the "parallel" batch axis.
    TB = min(tb, _round_up(B, 16))
    if B >= 32:
        TB = min(TB, _round_up(-(-B // 2), 16))
    grid = (pl.cdiv(B, TB),)               # ragged last block; no jnp.pad of x

    # Weight prep (tiny, one-time under jit): bf16 streams for matmul inputs,
    # f32 biases; w2/b2 zero-padded 10 -> 128 for unmasked 128-lane stores.
    w1_bf = w1.astype(jnp.bfloat16)
    w2_pad = jnp.zeros((H, NP), jnp.bfloat16).at[:, :NOUT].set(
        w2.astype(jnp.bfloat16))
    b1_f = b1.reshape(1, H).astype(jnp.float32)
    b2_pad = jnp.zeros((1, NP), jnp.float32).at[:, :NOUT].set(
        b2.reshape(1, NOUT).astype(jnp.float32))

    cost = pl.CostEstimate(
        flops=2 * B * IN * H + 2 * B * H * NP,
        transcendentals=0,
        bytes_accessed=(B * IN * x2d.dtype.itemsize   # x (native dtype)
                        + IN * H * 2                  # w1 (bf16)
                        + H * NP * 2                  # w2 (bf16, padded)
                        + (H + NP) * 4                # biases (f32)
                        + B * NP * 2),                # output (bf16)
    )

    out = pl.pallas_call(
        mlp_kernel,
        out_shape=jax.ShapeDtypeStruct((B, NP), jnp.bfloat16),
        grid=grid,
        in_specs=[
            pl.BlockSpec((TB, IN), lambda i: (i, 0)),   # x: streamed per tile
            pl.BlockSpec((IN, H), lambda i: (0, 0)),    # w1: VMEM-resident
            pl.BlockSpec((1, H), lambda i: (0, 0)),     # b1
            pl.BlockSpec((H, NP), lambda i: (0, 0)),    # w2 (padded)
            pl.BlockSpec((1, NP), lambda i: (0, 0)),    # b2 (padded)
        ],
        out_specs=pl.BlockSpec((TB, NP), lambda i: (i, 0)),
        compiler_params=pltpu.CompilerParams(
            dimension_semantics=("parallel",),
            vmem_limit_bytes=32 * 1024 * 1024,  # big tiles also fit v5e's scope
        ),
        cost_estimate=cost,
    )(x2d, w1_bf, b1_f, w2_pad, b2_pad)

    # Tiny slice + f32 cast; fuses into one trivial op under jit.
    return out[:, :NOUT].astype(jnp.float32)


def init_params(key):
    # Deterministic init mimicking torch.nn.Linear defaults
    # (uniform(-1/sqrt(fan_in), 1/sqrt(fan_in))).
    k1, k2, k3, k4 = jax.random.split(key, 4)
    in1, out1 = 28 * 28, 64
    in2, out2 = 64, 10
    bound1 = 1.0 / jnp.sqrt(in1)
    bound2 = 1.0 / jnp.sqrt(in2)
    w1 = jax.random.uniform(k1, (in1, out1), jnp.float32, -bound1, bound1)
    b1 = jax.random.uniform(k2, (1, out1), jnp.float32, -bound1, bound1)
    w2 = jax.random.uniform(k3, (in2, out2), jnp.float32, -bound2, bound2)
    b2 = jax.random.uniform(k4, (1, out2), jnp.float32, -bound2, bound2)
    return w1, b1, w2, b2


if __name__ == "__main__":
    key = jax.random.PRNGKey(0)
    kx, kp = jax.random.split(key)

    # Small MNIST-like batch: (B, C, H, W) = (2, 1, 28, 28)
    x = jax.random.normal(kx, (2, 1, 28, 28), jnp.float32)
    w1, b1, w2, b2 = init_params(kp)

    fwd = jax.jit(mlp_forward)
    out = jax.block_until_ready(fwd(x, w1, b1, w2, b2))
    assert out.shape == (2, 10)

    # Reference mirroring the kernel's bf16-input / f32-accumulate math.
    # (Kernel output is stored bf16, so allow bf16-level tolerance.)
    x2d = x.reshape(x.shape[0], -1)
    h_ref = jnp.dot(x2d.astype(jnp.bfloat16), w1.astype(jnp.bfloat16),
                    preferred_element_type=jnp.float32) + b1
    h_ref = jnp.maximum(h_ref, 0.0)
    ref = jnp.dot(h_ref.astype(jnp.bfloat16), w2.astype(jnp.bfloat16),
                  preferred_element_type=jnp.float32) + b2
    assert jnp.allclose(out, ref, atol=3e-2, rtol=3e-2), (
        jnp.max(jnp.abs(out - ref)))

    # Looser sanity check against a pure-f32 reference (matches the PyTorch
    # module up to the deliberate bf16 precision deviation).
    ref_f32 = jnp.maximum(x2d @ w1 + b1, 0.0) @ w2 + b2
    assert jnp.allclose(out, ref_f32, atol=6e-2, rtol=6e-2), (
        jnp.max(jnp.abs(out - ref_f32)))

    print("KERNEL_OK")
</pallas_src>

<mosaic_0001>
module attributes {stable_mosaic.version = 11 : i64} {
  func.func @mlp_kernel(%arg0: i32, %arg1: memref<16x784xf32, #tpu.memory_space<vmem>>, %arg2: memref<784x64xbf16, #tpu.memory_space<vmem>>, %arg3: memref<1x64xf32, #tpu.memory_space<vmem>>, %arg4: memref<64x128xbf16, #tpu.memory_space<vmem>>, %arg5: memref<1x128xf32, #tpu.memory_space<vmem>>, %arg6: memref<16x128xbf16, #tpu.memory_space<vmem>>) attributes {dimension_semantics = [#tpu.dimension_semantics<parallel>], iteration_bounds = array<i64: 1>, scalar_prefetch = 0 : i64, scratch_operands = 0 : i64, tpu.core_type = #tpu.core_type<tc>, window_params = [{transform_indices = @transform_0, window_bounds = array<i64: 16, 784>}, {pipeline_mode = #tpu.pipeline_mode<synchronous>, transform_indices = @transform_1, window_bounds = array<i64: 784, 64>}, {pipeline_mode = #tpu.pipeline_mode<synchronous>, transform_indices = @transform_2, window_bounds = array<i64: 1, 64>}, {pipeline_mode = #tpu.pipeline_mode<synchronous>, transform_indices = @transform_3, window_bounds = array<i64: 64, 128>}, {pipeline_mode = #tpu.pipeline_mode<synchronous>, transform_indices = @transform_4, window_bounds = array<i64: 1, 128>}, {transform_indices = @transform_5, window_bounds = array<i64: 16, 128>}]} {
    %c0 = arith.constant 0 : index
    %c0_0 = arith.constant 0 : index
    %0 = vector.load %arg1[%c0, %c0_0] : memref<16x784xf32, #tpu.memory_space<vmem>>, vector<16x784xf32>
    %1 = arith.truncf %0 : vector<16x784xf32> to vector<16x784xbf16>
    %c0_1 = arith.constant 0 : index
    %c0_2 = arith.constant 0 : index
    %2 = vector.load %arg2[%c0_1, %c0_2] : memref<784x64xbf16, #tpu.memory_space<vmem>>, vector<784x64xbf16>
    %cst = arith.constant dense<0.000000e+00> : vector<16x64xf32>
    %3 = tpu.matmul %1, %2, %cst {dimension_numbers = #tpu.dot_dimension_numbers<[1], [0], [0], [1], [0, 0, 1, 1], [], []>} : vector<16x784xbf16>, vector<784x64xbf16>, vector<16x64xf32> -> vector<16x64xf32>
    %c0_3 = arith.constant 0 : index
    %c0_4 = arith.constant 0 : index
    %4 = vector.load %arg3[%c0_3, %c0_4] : memref<1x64xf32, #tpu.memory_space<vmem>>, vector<1x64xf32>
    %5 = vector.broadcast %4 : vector<1x64xf32> to vector<16x64xf32>
    %6 = arith.addf %3, %5 : vector<16x64xf32>
    %cst_5 = arith.constant 0.000000e+00 : f32
    %7 = vector.broadcast %cst_5 : f32 to vector<16x64xf32>
    %8 = arith.maximumf %6, %7 : vector<16x64xf32>
    %9 = arith.truncf %8 : vector<16x64xf32> to vector<16x64xbf16>
    %c0_6 = arith.constant 0 : index
    %c0_7 = arith.constant 0 : index
    %10 = vector.load %arg4[%c0_6, %c0_7] : memref<64x128xbf16, #tpu.memory_space<vmem>>, vector<64x128xbf16>
    %cst_8 = arith.constant dense<0.000000e+00> : vector<16x128xf32>
    %11 = tpu.matmul %9, %10, %cst_8 {dimension_numbers = #tpu.dot_dimension_numbers<[1], [0], [0], [1], [0, 0, 1, 1], [], []>} : vector<16x64xbf16>, vector<64x128xbf16>, vector<16x128xf32> -> vector<16x128xf32>
    %c0_9 = arith.constant 0 : index
    %c0_10 = arith.constant 0 : index
    %12 = vector.load %arg5[%c0_9, %c0_10] : memref<1x128xf32, #tpu.memory_space<vmem>>, vector<1x128xf32>
    %13 = vector.broadcast %12 : vector<1x128xf32> to vector<16x128xf32>
    %14 = arith.addf %11, %13 : vector<16x128xf32>
    %15 = arith.truncf %14 : vector<16x128xf32> to vector<16x128xbf16>
    %c0_11 = arith.constant 0 : index
    %c0_12 = arith.constant 0 : index
    %16 = vector.load %arg6[%c0_11, %c0_12] : memref<16x128xbf16, #tpu.memory_space<vmem>>, vector<16x128xbf16>
    tpu.vector_store %arg6[%c0_11, %c0_12], %15 {strides = array<i32>} : memref<16x128xbf16, #tpu.memory_space<vmem>>, vector<16x128xbf16>,
    return
  }
  func.func @transform_0(%arg0: i32) -> (i32, i32) {
    %c0_i32 = arith.constant 0 : i32
    %c0_i32_0 = arith.constant 0 : i32
    return %arg0, %c0_i32 : i32, i32
  }
  func.func @transform_1(%arg0: i32) -> (i32, i32) {
    %c0_i32 = arith.constant 0 : i32
    %c0_i32_0 = arith.constant 0 : i32
    %c0_i32_1 = arith.constant 0 : i32
    return %c0_i32, %c0_i32_0 : i32, i32
  }
  func.func @transform_2(%arg0: i32) -> (i32, i32) {
    %c0_i32 = arith.constant 0 : i32
    %c0_i32_0 = arith.constant 0 : i32
    %c0_i32_1 = arith.constant 0 : i32
    return %c0_i32, %c0_i32_0 : i32, i32
  }
  func.func @transform_3(%arg0: i32) -> (i32, i32) {
    %c0_i32 = arith.constant 0 : i32
    %c0_i32_0 = arith.constant 0 : i32
    %c0_i32_1 = arith.constant 0 : i32
    return %c0_i32, %c0_i32_0 : i32, i32
  }
  func.func @transform_4(%arg0: i32) -> (i32, i32) {
    %c0_i32 = arith.constant 0 : i32
    %c0_i32_0 = arith.constant 0 : i32
    %c0_i32_1 = arith.constant 0 : i32
    return %c0_i32, %c0_i32_0 : i32, i32
  }
  func.func @transform_5(%arg0: i32) -> (i32, i32) {
    %c0_i32 = arith.constant 0 : i32
    %c0_i32_0 = arith.constant 0 : i32
    return %arg0, %c0_i32 : i32, i32
  }
}

</mosaic_0001>

<bundles_post_ra>
// kernel: mlp_forward.1
= control target key start
LH: loop header
LB: loop body
LE: loop exit
PB: predicated region body
PF: predicated region fallthrough
CT: control target
= control target key end

     0   :  { %vm507_vm0 = vcmask 130048   ;;  %vm648_vm1 = vcmask 523264   ;;  %vm672_vm2 = vcmask 1040384   ;;  %s1272_s0 = inlined_call_operand.vmem [shape: f32[2,784], index: 0, kind: input, shape index: {}]   ;;  %s1273_s1 = inlined_call_operand.vmem [shape: bf16[784,64], index: 1, kind: input, shape index: {}]   ;;  %s1274_s2 = inlined_call_operand.vmem [shape: f32[1,64], index: 2, kind: input, shape index: {}]   ;;  %s1275_s3 = inlined_call_operand.vmem [shape: bf16[64,128], index: 3, kind: input, shape index: {}]   ;;  %s1276_s4 = inlined_call_operand.vmem [shape: f32[1,128], index: 4, kind: input, shape index: {}]   ;;  %s1277_s5 = inlined_call_operand.vmem [shape: bf16[2,128], index: 5, kind: output, shape index: {}]  }
   0x1   :  { %v978_v0 = vld [vmem:[%s1273_s1 + $0x38] sm:$0xff]  ;;  %v977_v4 = vld [vmem:[%s1273_s1 + $0x30] sm:$0xff]  ;;  %v976_v8 = vld [vmem:[%s1273_s1 + $0x28] sm:$0xff] }
   0x2   :  { %v986_v1 = vld [vmem:[%s1273_s1 + $0x78] sm:$0xff]  ;;  %511 = vmatpush.bf16.msra.mxu0 %v978_v0  ;;  %v985_v5 = vld [vmem:[%s1273_s1 + $0x70] sm:$0xff]  ;;  %v984_v9 = vld [vmem:[%s1273_s1 + $0x68] sm:$0xff] }
   0x3   :  { %v994_v2 = vld [vmem:[%s1273_s1 + $0xb8] sm:$0xff]  ;;  %525 = vmatpush.bf16.msra.mxu1 %v986_v1  ;;  %v993_v6 = vld [vmem:[%s1273_s1 + $0xb0] sm:$0xff]  ;;  %v992_v10 = vld [vmem:[%s1273_s1 + $0xa8] sm:$0xff] }
   0x4   :  { %v1002_v3 = vld [vmem:[%s1273_s1 + $0xf8] sm:$0xff]  ;;  %539 = vmatpush.bf16.msra.mxu2 %v994_v2  ;;  %v1001_v7 = vld [vmem:[%s1273_s1 + $0xf0] sm:$0xff]  ;;  %v1000_v11 = vld [vmem:[%s1273_s1 + $0xe8] sm:$0xff] }
   0x5   :  { %553 = vmatpush.bf16.msra.mxu3 %v1002_v3  ;;  %v975_v12 = vld [vmem:[%s1273_s1 + $0x20] sm:$0xff]  ;;  %v23_v17 = vld [vmem:[%s1272_s0 + $0xe] sm:$0xff]  ;;  %v974_v20 = vld [vmem:[%s1273_s1 + $0x18] sm:$0xff] }
   0x6   :  { %512 = vmatpush.bf16.msra.mxu0 %v977_v4  ;;  %v983_v13 = vld [vmem:[%s1273_s1 + $0x60] sm:$0xff]  ;;  %v27_v19 = vld [vmem:[%s1272_s0 + $0x2a] sm:$0xff]  ;;  %v982_v21 = vld [vmem:[%s1273_s1 + $0x58] sm:$0xff]  ;;  %55 = vst [vmem:[#allocation1 + $0x1] ss:$4 sm:$0xff] %v23_v17 }
   0x7   :  { %526 = vmatpush.bf16.msra.mxu1 %v985_v5  ;;  %v991_v14 = vld [vmem:[%s1273_s1 + $0xa0] sm:$0xff]  ;;  %v990_v22 = vld [vmem:[%s1273_s1 + $0x98] sm:$0xff]  ;;  %59 = vst [vmem:[#allocation1 + $0x3] ss:$4 sm:$0xff] %v27_v19  ;;  %v22_v24 = vld [vmem:[%s1272_s0 + $0x8] sm:$0x3f] }
   0x8   :  { %540 = vmatpush.bf16.msra.mxu2 %v993_v6  ;;  %v999_v15 = vld [vmem:[%s1273_s1 + $0xe0] sm:$0xff]  ;;  %v998_v23 = vld [vmem:[%s1273_s1 + $0xd8] sm:$0xff]  ;;  %v973_v25 = vld [vmem:[%s1273_s1 + $0x10] sm:$0xff]  ;;  %61 = vst [vmem:[#allocation1 + $0x20] ss:$4 sm:$0xff] %v22_v24 }
   0x9   :  { %554 = vmatpush.bf16.msra.mxu3 %v1001_v7  ;;  %v21_v16 = vld [vmem:[%s1272_s0] sm:$0xff]  ;;  %v981_v26 = vld [vmem:[%s1273_s1 + $0x50] sm:$0xff]  ;;  %v972_v31 = vld [vmem:[%s1273_s1 + $0x8] sm:$0xff] }
   0xa   :  { %513 = vmatpush.bf16.msra.mxu0 %v976_v8  ;;  %v25_v18 = vld [vmem:[%s1272_s0 + $0x1c] sm:$0xff]  ;;  %53 = vst [vmem:[#allocation1] ss:$4 sm:$0xff] %v21_v16  ;;  %v24_v27 = vld [vmem:[%s1272_s0 + $0x16] sm:$0x3f]  ;;  %v980_v32 = vld [vmem:[%s1273_s1 + $0x48] sm:$0xff] }
   0xb   :  { %527 = vmatpush.bf16.msra.mxu1 %v984_v9  ;;  %57 = vst [vmem:[#allocation1 + $0x2] ss:$4 sm:$0xff] %v25_v18  ;;  %v989_v28 = vld [vmem:[%s1273_s1 + $0x90] sm:$0xff]  ;;  %v26_v30 = vld [vmem:[%s1272_s0 + $0x24] sm:$0x3f]  ;;  %v29_v35 = vld [vmem:[%s1272_s0 + $0x38] sm:$0xff] }
   0xc   :  { %541 = vmatpush.bf16.msra.mxu2 %v992_v10  ;;  %v997_v29 = vld [vmem:[%s1273_s1 + $0xd0] sm:$0xff]  ;;  %v988_v33 = vld [vmem:[%s1273_s1 + $0x88] sm:$0xff]  ;;  %63 = vst [vmem:[#allocation1 + $0x21] ss:$4 sm:$0xff] %v24_v27  ;;  %v971_v43 = vld [vmem:[%s1273_s1] sm:$0xff] }
   0xd   :  { %555 = vmatpush.bf16.msra.mxu3 %v1000_v11  ;;  %v996_v34 = vld [vmem:[%s1273_s1 + $0xc8] sm:$0xff]  ;;  %v33_v37 = vld [vmem:[%s1272_s0 + $0x54] sm:$0xff]  ;;  %65 = vst [vmem:[#allocation1 + $0x22] ss:$4 sm:$0xff] %v26_v30  ;;  %v979_v44 = vld [vmem:[%s1273_s1 + $0x40] sm:$0xff] }
   0xe   :  { %514 = vmatpush.bf16.msra.mxu0 %v975_v12  ;;  %v31_v36 = vld [vmem:[%s1272_s0 + $0x46] sm:$0xff]  ;;  %v28_v45 = vld [vmem:[%s1272_s0 + $0x32] sm:$0x3f]  ;;  %v1010_v46 = vld [vmem:[%s1273_s1 + $0x138] sm:$0xff] }
   0xf   :  { %528 = vmatpush.bf16.msra.mxu1 %v983_v13  ;;  %v35_v42 = vld [vmem:[%s1272_s0 + $0x62] sm:$0xff]  ;;  %v1018_v47 = vld [vmem:[%s1273_s1 + $0x178] sm:$0xff]  ;;  %67 = vst [vmem:[#allocation1 + $0x23] ss:$4 sm:$0xff] %v28_v45  ;;  %v1009_v51 = vld [vmem:[%s1273_s1 + $0x130] sm:$0xff] }
  0x10   :  { %542 = vmatpush.bf16.msra.mxu2 %v991_v14  ;;  %v987_v48 = vld [vmem:[%s1273_s1 + $0x80] sm:$0xff]  ;;  %v1017_v52 = vld [vmem:[%s1273_s1 + $0x170] sm:$0xff]  ;;  %v1008_v53 = vld [vmem:[%s1273_s1 + $0x128] sm:$0xff] }
  0x11   :  { %556 = vmatpush.bf16.msra.mxu3 %v999_v15  ;;  %v995_v49 = vld [vmem:[%s1273_s1 + $0xc0] sm:$0xff]  ;;  %v1016_v54 = vld [vmem:[%s1273_s1 + $0x168] sm:$0xff]  ;;  %v1006_v8 = vld [vmem:[%s1273_s1 + $0x118] sm:$0xff] }
  0x12   :  { %515 = vmatpush.bf16.msra.mxu0 %v974_v20  ;;  %v68_v38 = vld.sshfl [vmem:[#allocation1] sm:$0xff pattern:$0x73625140]  ;;  %v69_v39 = vld.sshfl [vmem:[#allocation1 + $0x8] sm:$0xff pattern:$0x73625140] }
  0x13   :  { %529 = vmatpush.bf16.msra.mxu1 %v982_v21  ;;  %v70_v40 = vld.sshfl [vmem:[#allocation1 + $0x10] sm:$0xff pattern:$0x73625140]  ;;  %v71_v41 = vld.sshfl [vmem:[#allocation1 + $0x18] sm:$0xff pattern:$0x73625140] }
  0x14   :  { %543 = vmatpush.bf16.msra.mxu2 %v990_v22  ;;  %75 = vst [vmem:[#allocation1] ss:$4 sm:$0xff] %v29_v35  ;;  %v1019_v50 = vld [vmem:[%s1273_s1 + $0x180] sm:$0xff]  ;;  %v32_v58 = vld [vmem:[%s1272_s0 + $0x4e] sm:$0x3f]  ;;  %v1014_v9 = vld [vmem:[%s1273_s1 + $0x158] sm:$0xff] }
  0x15   :  { %557 = vmatpush.bf16.msra.mxu3 %v998_v23  ;;  %76 = vst [vmem:[#allocation1 + $0x1] ss:$4 sm:$0xff] %v31_v36  ;;  %v30_v55 = vld [vmem:[%s1272_s0 + $0x40] sm:$0x3f]  ;;  %v36_v6 = vld [vmem:[%s1272_s0 + $0x6a] sm:$0x3f] }
  0x16   :  { %516 = vmatpush.bf16.msra.mxu0 %v973_v25  ;;  %77 = vst [vmem:[#allocation1 + $0x2] ss:$4 sm:$0xff] %v33_v37  ;;  %v72_v1 = vld.sshfl [vmem:[#allocation1 + $0x20] sm:$0xff pattern:$0x73625140]  ;;  %v1005_v10 = vld [vmem:[%s1273_s1 + $0x110] sm:$0xff] }
  0x17   :  { %530 = vmatpush.bf16.msra.mxu1 %v981_v26  ;;  %78 = vst [vmem:[#allocation1 + $0x3] ss:$4 sm:$0xff] %v35_v42  ;;  %v73_v2 = vld.sshfl [vmem:[#allocation1 + $0x28] sm:$0xff pattern:$0x73625140]  ;;  %v1007_v5 = vld [vmem:[%s1273_s1 + $0x120] sm:$0xff] }
  0x18   :  { %544 = vmatpush.bf16.msra.mxu2 %v989_v28  ;;  %v34_v3 = vld [vmem:[%s1272_s0 + $0x5c] sm:$0x3f]  ;;  %v74_v4 = vld.sshfl [vmem:[#allocation1 + $0x30] sm:$0xff pattern:$0x73625140]  ;;  %v1004_v14 = vld [vmem:[%s1273_s1 + $0x108] sm:$0xff] }
  0x19   :  { %558 = vmatpush.bf16.msra.mxu3 %v997_v29  ;;  %79 = vst [vmem:[#allocation1 + $0x20] ss:$4 sm:$0xff] %v30_v55  ;;  %v1015_v7 = vld [vmem:[%s1273_s1 + $0x160] sm:$0xff]  ;;  %v1013_v11 = vld [vmem:[%s1273_s1 + $0x150] sm:$0xff]  ;;  %v1012_v15 = vld [vmem:[%s1273_s1 + $0x148] sm:$0xff] }
  0x1a   :  { %517 = vmatpush.bf16.msra.mxu0 %v972_v31  ;;  %80 = vst [vmem:[#allocation1 + $0x21] ss:$4 sm:$0xff] %v32_v58  ;;  %v1003_v16 = vld [vmem:[%s1273_s1 + $0x100] sm:$0xff]  ;;  %v1023_v22 = vld [vmem:[%s1275_s3 + $0x18] sm:$0xff]  ;;  %v1022_v23 = vld [vmem:[%s1275_s3 + $0x10] sm:$0xff] }
  0x1b   :  { %531 = vmatpush.bf16.msra.mxu1 %v980_v32  ;;  %81 = vst [vmem:[#allocation1 + $0x22] ss:$4 sm:$0xff] %v34_v3  ;;  %v1011_v18 = vld [vmem:[%s1273_s1 + $0x140] sm:$0xff]  ;;  %v1021_v24 = vld [vmem:[%s1275_s3 + $0x8] sm:$0xff] }
  0x1c   :  { %545 = vmatpush.bf16.msra.mxu2 %v988_v33  ;;  %82 = vst [vmem:[#allocation1 + $0x23] ss:$4 sm:$0xff] %v36_v6  ;;  %v1020_v28 = vld [vmem:[%s1275_s3] sm:$0xff] }
  0x1d   :  { %559 = vmatpush.bf16.msra.mxu3 %v996_v34  ;;  %v1024_v29 = vld [vmem:[%s1274_s2] ss:$0 sm:$0xff] }
  0x1e   :  { %518 = vmatpush.bf16.msra.mxu0 %v971_v43  ;;  %v85_v56 = vld.sshfl [vmem:[#allocation1 + $0x10] sm:$0xff pattern:$0x73625140]  ;;  %v83_v57 = vld.sshfl [vmem:[#allocation1] sm:$0xff pattern:$0x73625140] }
  0x1f   :  { %532 = vmatpush.bf16.msra.mxu1 %v979_v44  ;;  %v106_v59 = vpack.c.bf16 %v85_v56, %v70_v40  ;;  %v104_v60 = vpack.c.bf16 %v83_v57, %v68_v38  ;;  %v86_v61 = vld.sshfl [vmem:[#allocation1 + $0x18] sm:$0xff pattern:$0x73625140]  ;;  %v84_v62 = vld.sshfl [vmem:[#allocation1 + $0x8] sm:$0xff pattern:$0x73625140] }
  0x20   :  { %546 = vmatpush.bf16.msra.mxu2 %v987_v48  ;;  %v107_v63 = vpack.c.bf16 %v86_v61, %v71_v41  ;;  %v105_v0 = vpack.c.bf16 %v84_v62, %v69_v39  ;;  %v1025_v58 = vld [vmem:[%s1276_s4] ss:$0 sm:$0xff] }
  0x21   :  { %560 = vmatpush.bf16.msra.mxu3 %v995_v49  ;;  %519 = vmatmul.bf16.vlgmr.msra.gmra.mxu0 %v104_v60 }
  0x22   :  { %567 = vmatpush.bf16.msrb.mxu0 %v1010_v46  ;;  %533 = vmatmul.bf16.vlgmr.msra.gmra.mxu1 %v105_v0 }
  0x23   :  { %581 = vmatpush.bf16.msrb.mxu1 %v1018_v47  ;;  %547 = vmatmul.bf16.vlgmr.msra.gmra.mxu2 %v106_v59  ;;  %v89_v12 = vld.sshfl [vmem:[#allocation1 + $0x30] sm:$0xff pattern:$0x73625140]  ;;  %v87_v17 = vld.sshfl [vmem:[#allocation1 + $0x20] sm:$0xff pattern:$0x73625140] }
  0x24   :  { %602 = vmatpush.bf16.msrb.mxu2 %v1019_v50  ;;  %561 = vmatmul.bf16.vlgmr.msra.gmra.mxu3 %v107_v63  ;;  %v110_v13 = vpack.c.bf16 %v89_v12, %v74_v4  ;;  %v88_v19 = vld.sshfl [vmem:[#allocation1 + $0x28] sm:$0xff pattern:$0x73625140]  ;;  %v108_v20 = vpack.c.bf16 %v87_v17, %v72_v1 }
  0x25   :  { %v109_v21 = vpack.c.bf16 %v88_v19, %v73_v2  ;;  %656 = vmatpush.bf16.msrb.mxu3 %v1023_v22 }
  0x26   :  { %568 = vmatpush.bf16.msrb.mxu0 %v1009_v51 }
  0x27   :  { %582 = vmatpush.bf16.msrb.mxu1 %v1017_v52 }
  0x29   :  { %657 = vmatpush.bf16.msrb.mxu3 %v1022_v23 }
  0x2a   :  { %569 = vmatpush.bf16.msrb.mxu0 %v1008_v53 }
  0x2b   :  { %583 = vmatpush.bf16.msrb.mxu1 %v1016_v54 }
  0x2d   :  { %658 = vmatpush.bf16.msrb.mxu3 %v1021_v24 }
  0x2e   :  { %570 = vmatpush.bf16.msrb.mxu0 %v1007_v5 }
  0x2f   :  { %584 = vmatpush.bf16.msrb.mxu1 %v1015_v7 }
  0x31   :  { %659 = vmatpush.bf16.msrb.mxu3 %v1020_v28 }
  0x32   :  { %571 = vmatpush.bf16.msrb.mxu0 %v1006_v8 }
  0x33   :  { %585 = vmatpush.bf16.msrb.mxu1 %v1014_v9  ;;  %953 = vmatmul.msk.bf16.vlgmr.msrb.gmra.mxu2 %vm507_vm0, %v110_v13 }
  0x36   :  { %572 = vmatpush.bf16.msrb.mxu0 %v1005_v10 }
  0x37   :  { %586 = vmatpush.bf16.msrb.mxu1 %v1013_v11 }
  0x3a   :  { %573 = vmatpush.bf16.msrb.mxu0 %v1004_v14 }
  0x3b   :  { %587 = vmatpush.bf16.msrb.mxu1 %v1012_v15 }
  0x3e   :  { %574 = vmatpush.bf16.msrb.mxu0 %v1003_v16 }
  0x3f   :  { %588 = vmatpush.bf16.msrb.mxu1 %v1011_v18 }
  0x41   :  { %575 = vmatmul.bf16.vlgmr.msrb.gmra.mxu0 %v108_v20 }
  0x42   :  { %589 = vmatmul.bf16.vlgmr.msrb.gmra.mxu1 %v109_v21 }
  0x9e   :  { %v520_v25 = vpop.f32.mrf.mxu0 }
  0x9f   :  { %v534_v27 = vpop.f32.mrf.mxu1  ;;  %v521_v30 = vadd.f32 %v1024_v29, %v520_v25 }
  0xa1   :  { %v535_v33 = vadd.f32 %v534_v27, %v521_v30 }
  0xa6   :  { %v548_v26 = vpop.f32.mrf.mxu2  ;;  %v522_v31 = vpop.f32.mrf.mxu0 }
  0xa7   :  { %v536_v34 = vpop.f32.mrf.mxu1  ;;  %v562_v35 = vpop.f32.mrf.mxu3  ;;  %v523_v36 = vadd.f32 %v1024_v29, %v522_v31  ;;  %v549_v37 = vadd.f32 %v548_v26, %v535_v33 }
  0xa9   :  { %v537_v38 = vadd.f32 %v536_v34, %v523_v36  ;;  %v563_v40 = vadd.f32 %v562_v35, %v549_v37 }
  0xae   :  { %v550_v32 = vpop.f32.mrf.mxu2 }
  0xaf   :  { %v551_v43 = vadd.f32 %v550_v32, %v537_v38  ;;  %v564_v45 = vpop.f32.mrf.mxu3 }
  0xb1   :  { %v565_v46 = vadd.f32 %v564_v45, %v551_v43 }
  0xb6   :  { %v604_v42 = vpop.f32.mrf.mxu2 }
  0xbe   :  { %v576_v39 = vpop.f32.mrf.mxu0  ;;  %v606_v53 = vpop.f32.mrf.mxu2 }
  0xbf   :  { %v590_v41 = vpop.f32.mrf.mxu1  ;;  %v577_v44 = vadd.f32 %v576_v39, %v563_v40 }
  0xc1   :  { %v591_v47 = vadd.f32 %v590_v41, %v577_v44 }
  0xc3   :  { %v605_v51 = vadd.f32 %v604_v42, %v591_v47 }
  0xc5   :  { %v609_v55 = vmax.f32 %v605_v51, 0.0 }
  0xc6   :  { %v578_v48 = vpop.f32.mrf.mxu0 }
  0xc7   :  { %v579_v49 = vadd.f32 %v578_v48, %v565_v46  ;;  %v592_v50 = vpop.f32.mrf.mxu1 }
  0xc9   :  { %v593_v52 = vadd.f32 %v592_v50, %v579_v49 }
  0xcb   :  { %v607_v54 = vadd.f32 %v606_v53, %v593_v52 }
  0xcd   :  { %v610_v56 = vmax.f32 %v607_v54, 0.0 }
  0xcf   :  { %v611_v57 = vpack.c.bf16 %v610_v56, %v609_v55 }
  0xd1   :  { %970 = vmatmul.msk.bf16.vlgmr.msrb.gmra.mxu3 %vm648_vm1, %v611_v57 }
 0x154   :  { %v661_v59 = vpop.f32.mrf.mxu3 }
 0x155   :  { %v662_v60 = vadd.f32 %v1025_v58, %v661_v59 }
 0x157   :  { %v666_v61 = vpack.c.bf16 %v662_v60, %v662_v60 }
 0x159   :  { %v670_v62 = vrot.slane %v666_v61, 3 }
 0x15b   :  { %v675_v63 = vsel %vm672_vm2, %v666_v61, %v670_v62 }
 0x15c   :  { %708 = vst [vmem:[#allocation2] sm:$0x1] %v675_v63  ;;  %v663_v0 = vpop.f32.mrf.mxu3 }
 0x163   :  { %v734_v1 = vld [vmem:[#allocation2] sm:$0x1] }
 0x164   :  { %735 = vst [vmem:[%s1277_s5] sm:$0x1] %v734_v1 }

</bundles_post_ra>
